<compile_context>
chip_gen: v7x
topology: tpu7x:2x2x1
jax: 0.10.0
libtpu: 0.0.40
codegen_flags: <defaults>
</compile_context>

<pallas_src>
import numpy as np
import jax
import jax.numpy as jnp
from jax import lax
from jax.experimental import pallas as pl
from jax.experimental.pallas import tpu as pltpu


def _round_up(x: int, m: int) -> int:
    return (x + m - 1) // m * m


def _cdiv(a: int, b: int) -> int:
    return -(-a // b)


def _fit_tile(extent: int, cap: int, align: int) -> int:
    """Largest aligned tile <= cap that minimizes padding of `extent`."""
    if extent <= cap:
        return extent
    return _round_up(_cdiv(extent, _cdiv(extent, cap)), align)


def _make_linear_kernel(has_bias: bool, use_scratch: bool):
    """One grid step: o[i,j] (+)= x_tile(tm,tk) contracted with w_tile(tn,tk)."""

    def kernel(*refs):
        it = iter(refs)
        x_ref = next(it)
        w_ref = next(it)
        b_ref = next(it) if has_bias else None
        o_ref = next(it)
        acc_ref = next(it) if use_scratch else o_ref   # f32 out: accumulate in o_ref

        k = pl.program_id(2)

        # (tm, tk) x (tn, tk) -> (tm, tn): contract the shared last (D_in) dim
        # directly on the MXU — weight stays in its native nn.Linear layout,
        # no materialized W.T anywhere.
        part = lax.dot_general(
            x_ref[...], w_ref[...],
            dimension_numbers=(((1,), (1,)), ((), ())),
            preferred_element_type=jnp.float32)

        @pl.when(k == 0)
        def _():
            acc_ref[...] = part          # assign, not zero-init + add

        @pl.when(k > 0)
        def _():
            acc_ref[...] += part

        if has_bias or use_scratch:
            @pl.when(k == pl.num_programs(2) - 1)
            def _():
                res = acc_ref[...]
                if has_bias:
                    res = res + b_ref[...].astype(jnp.float32)
                o_ref[...] = res.astype(o_ref.dtype)

    return kernel


def coral_forward(x, weight, bias=None, *, compute_dtype=None,
                  tm=None, tn=None, tk=None, allow_xla_fallback=True):
    """CORAL forward: y = x @ weight.T (+ bias).

    x      : (B, D_in)
    weight : (D_out, D_in)   -- native nn.Linear layout, never transposed in HBM
    bias   : (D_out,) or None
    """
    B, D_in = x.shape
    D_out, d_in_w = weight.shape
    assert d_in_w == D_in
    out_dtype = x.dtype

    # bf16 MXU compute by default for f32 inputs (f32 accumulation throughout).
    if compute_dtype is None:
        compute_dtype = jnp.bfloat16 if x.dtype == jnp.float32 else x.dtype
    c_bytes = np.dtype(compute_dtype).itemsize
    row_align = 16 if c_bytes <= 2 else 8        # full sublane packing for bf16

    B_a = _round_up(B, row_align)
    K_a = _round_up(D_in, 128)
    N_a = _round_up(D_out, 128)

    if tm is None:
        # Single batch tile when modest -> the weight streams from HBM once.
        tm = _fit_tile(B_a, 512, row_align)
    if tn is None:
        tn = 512 if N_a >= 512 else (256 if N_a >= 256 else N_a)
        # v7x has 2 TensorCores: keep >= 2 programs on the parallel axes.
        if _cdiv(B_a, tm) == 1 and _cdiv(N_a, tn) == 1 and tn >= 256:
            tn //= 2
    if tk is None:
        tk = _fit_tile(K_a, 2048, 128)

    B_p, N_p, K_p = _round_up(B_a, tm), _round_up(N_a, tn), _round_up(K_a, tk)
    grid = (B_p // tm, N_p // tn, K_p // tk)

    if allow_xla_fallback and grid == (1, 1, 1):
        # Tiny layer: pallas_call fixed overhead + pad/slice copies dominate.
        y = jnp.dot(x.astype(compute_dtype), weight.astype(compute_dtype).T,
                    preferred_element_type=jnp.float32)
        if bias is not None:
            y = y + bias.astype(jnp.float32)
        return y.astype(out_dtype)

    has_bias = bias is not None
    use_scratch = (out_dtype != jnp.float32)     # f32 out accumulates in o_ref

    # Cast / zero-pad (zeros contribute 0 to the reduction; padded rows/cols of
    # the output are sliced away).  With allow_input_fusion these fuse into the
    # pallas_call inputs instead of producing padded HBM copies.
    x_p = x.astype(compute_dtype)
    w_p = weight.astype(compute_dtype)
    if (B_p, K_p) != (B, D_in):
        x_p = jnp.pad(x_p, ((0, B_p - B), (0, K_p - D_in)))
    if (N_p, K_p) != (D_out, D_in):
        w_p = jnp.pad(w_p, ((0, N_p - D_out), (0, K_p - D_in)))

    inputs = [x_p, w_p]
    in_specs = [
        pl.BlockSpec((tm, tk), lambda i, j, k: (i, k)),
        pl.BlockSpec((tn, tk), lambda i, j, k: (j, k)),     # native (D_out, D_in)
    ]
    if has_bias:
        b_p = bias.astype(jnp.float32).reshape(1, D_out)
        if N_p != D_out:
            b_p = jnp.pad(b_p, ((0, 0), (0, N_p - D_out)))
        inputs.append(b_p)
        in_specs.append(pl.BlockSpec((1, tn), lambda i, j, k: (0, j)))

    scratch_shapes = [pltpu.VMEM((tm, tn), jnp.float32)] if use_scratch else []

    out = pl.pallas_call(
        _make_linear_kernel(has_bias, use_scratch),
        out_shape=jax.ShapeDtypeStruct((B_p, N_p), out_dtype),
        grid_spec=pltpu.PrefetchScalarGridSpec(
            num_scalar_prefetch=0,
            grid=grid,
            in_specs=in_specs,
            out_specs=pl.BlockSpec((tm, tn), lambda i, j, k: (i, j)),
            scratch_shapes=scratch_shapes,
        ),
        compiler_params=pltpu.CompilerParams(
            dimension_semantics=("parallel", "parallel", "arbitrary"),
            vmem_limit_bytes=48 * 1024 * 1024,
            allow_input_fusion=[True] * len(inputs),
        ),
        cost_estimate=pl.CostEstimate(
            flops=2 * B_p * K_p * N_p,
            transcendentals=0,
            bytes_accessed=(B_p * K_p + N_p * K_p) * c_bytes
                           + B_p * N_p * np.dtype(out_dtype).itemsize),
    )(*inputs)

    if (B_p, N_p) != (B, D_out):
        out = out[:B, :D_out]
    return out


def _init_params(key, input_dim, output_dim, use_bias=False):
    """Mirror CorrelationAlignment._initialize_weights (eye / orthogonal, zero bias)."""
    if input_dim == output_dim:
        w = jnp.eye(output_dim, input_dim, dtype=jnp.float32)
    else:
        a = jax.random.normal(key, (max(output_dim, input_dim),
                                    min(output_dim, input_dim)), jnp.float32)
        q, r = jnp.linalg.qr(a)
        q = q * jnp.sign(jnp.diag(r))
        w = q if output_dim >= input_dim else q.T          # (D_out, D_in)
    b = jnp.zeros((output_dim,), jnp.float32) if use_bias else None
    return w, b


if __name__ == "__main__":
    key = jax.random.PRNGKey(0)
    keys = jax.random.split(key, 8)

    # ---- Case 1: exact check, multi-tile grid on every axis (f32 compute) ----
    # Integer-valued data -> every product / partial sum is exact in bf16 and
    # f32, so any tiling/indexing bug appears as an O(1) error regardless of
    # MXU precision.
    B, D_in, D_out = 24, 640, 384
    x1 = jax.random.randint(keys[0], (B, D_in), -2, 3).astype(jnp.float32)
    w1 = jax.random.randint(keys[1], (D_out, D_in), -2, 3).astype(jnp.float32)
    y1 = jax.block_until_ready(
        coral_forward(x1, w1, compute_dtype=jnp.float32, tm=8, tn=128, tk=128))
    assert y1.shape == (B, D_out)
    assert jnp.allclose(y1, x1 @ w1.T, atol=1e-5, rtol=0), "case1 mismatch"

    # ---- Case 2: exact check, auto tiles, unaligned dims + fused bias (bf16) ----
    B, D_in, D_out = 20, 520, 300
    x2 = jax.random.randint(keys[2], (B, D_in), -2, 3).astype(jnp.float32)
    w2 = jax.random.randint(keys[3], (D_out, D_in), -2, 3).astype(jnp.float32)
    b2 = jax.random.randint(keys[4], (D_out,), -2, 3).astype(jnp.float32)
    y2 = jax.block_until_ready(coral_forward(x2, w2, b2))
    assert y2.shape == (B, D_out)
    assert jnp.allclose(y2, x2 @ w2.T + b2, atol=1e-5, rtol=0), "case2 mismatch"

    # ---- Case 3: module-faithful orthogonal init, default bf16 path, jitted ----
    B, D_in, D_out = 16, 1024, 512
    w3, b3 = _init_params(keys[5], D_in, D_out, use_bias=False)
    x3 = jax.random.normal(keys[6], (B, D_in), jnp.float32)
    fwd = jax.jit(lambda xx, ww: coral_forward(xx, ww))
    y3 = jax.block_until_ready(fwd(x3, w3))
    ref3 = jnp.dot(x3, w3.T, precision=lax.Precision.HIGHEST)
    assert y3.shape == (B, D_out)
    assert jnp.allclose(y3, ref3, atol=5e-2, rtol=5e-2), "case3 mismatch"

    # bf16 activations -> bf16 output (exercises the f32 scratch-accumulator path)
    x3b = x3.astype(jnp.bfloat16)
    y3b = jax.block_until_ready(coral_forward(x3b, w3))
    ref3b = jnp.dot(x3b, w3.astype(jnp.bfloat16).T,
                    preferred_element_type=jnp.float32).astype(jnp.bfloat16)
    assert y3b.dtype == jnp.bfloat16
    assert jnp.allclose(y3b.astype(jnp.float32), ref3b.astype(jnp.float32),
                        atol=2e-2, rtol=2e-2), "case3-bf16 mismatch"

    # ---- Case 4: tiny layer (identity init) -> XLA fallback path ----
    B, D_in, D_out = 8, 32, 32
    x4 = jax.random.randint(keys[7], (B, D_in), -2, 3).astype(jnp.float32)
    w4, _ = _init_params(keys[7], D_in, D_out)        # eye when dims match
    y4 = jax.block_until_ready(coral_forward(x4, w4))
    assert jnp.allclose(y4, x4, atol=1e-6), "case4 mismatch"

    # TODO(synk): coral_loss / _compute_covariance / get_feature_statistics are
    # training-time analysis helpers, not part of forward(); not kernelized.
    print("KERNEL_OK")
</pallas_src>

<mosaic_0001>
module attributes {stable_mosaic.version = 11 : i64} {
  func.func @kernel(%arg0: i32, %arg1: i32, %arg2: i32, %arg3: memref<8x128xf32, #tpu.memory_space<vmem>>, %arg4: memref<128x128xf32, #tpu.memory_space<vmem>>, %arg5: memref<8x128xf32, #tpu.memory_space<vmem>>) attributes {dimension_semantics = [#tpu.dimension_semantics<parallel>, #tpu.dimension_semantics<parallel>, #tpu.dimension_semantics<arbitrary>], iteration_bounds = array<i64: 3, 3, 5>, scalar_prefetch = 0 : i64, scratch_operands = 0 : i64, tpu.core_type = #tpu.core_type<tc>, window_params = [{transform_indices = @transform_0, window_bounds = array<i64: 8, 128>}, {transform_indices = @transform_1, window_bounds = array<i64: 128, 128>}, {transform_indices = @transform_2, window_bounds = array<i64: 8, 128>}]} {
    %c0 = arith.constant 0 : index
    %c0_0 = arith.constant 0 : index
    %0 = vector.load %arg3[%c0, %c0_0] : memref<8x128xf32, #tpu.memory_space<vmem>>, vector<8x128xf32>
    %c0_1 = arith.constant 0 : index
    %c0_2 = arith.constant 0 : index
    %1 = vector.load %arg4[%c0_1, %c0_2] : memref<128x128xf32, #tpu.memory_space<vmem>>, vector<128x128xf32>
    %cst = arith.constant dense<0.000000e+00> : vector<8x128xf32>
    %2 = tpu.matmul %0, %1, %cst {dimension_numbers = #tpu.dot_dimension_numbers<[1], [1], [0], [0], [0, 0, 1, 0], [], []>} : vector<8x128xf32>, vector<128x128xf32>, vector<8x128xf32> -> vector<8x128xf32>
    %c0_i32 = arith.constant 0 : i32
    %3 = arith.cmpi eq, %arg2, %c0_i32 : i32
    %4 = arith.extui %3 : i1 to i32
    %c0_i32_3 = arith.constant 0 : i32
    %5 = arith.cmpi ne, %4, %c0_i32_3 : i32
    scf.if %5 {
      %c0_6 = arith.constant 0 : index
      %c0_7 = arith.constant 0 : index
      %9 = vector.load %arg5[%c0_6, %c0_7] : memref<8x128xf32, #tpu.memory_space<vmem>>, vector<8x128xf32>
      tpu.vector_store %arg5[%c0_6, %c0_7], %2 {strides = array<i32>} : memref<8x128xf32, #tpu.memory_space<vmem>>, vector<8x128xf32>,
    } else {
    }
    %c0_i32_4 = arith.constant 0 : i32
    %6 = arith.cmpi sgt, %arg2, %c0_i32_4 : i32
    %7 = arith.extui %6 : i1 to i32
    %c0_i32_5 = arith.constant 0 : i32
    %8 = arith.cmpi ne, %7, %c0_i32_5 : i32
    scf.if %8 {
      %c0_6 = arith.constant 0 : index
      %c0_7 = arith.constant 0 : index
      %9 = vector.load %arg5[%c0_6, %c0_7] : memref<8x128xf32, #tpu.memory_space<vmem>>, vector<8x128xf32>
      %10 = arith.addf %9, %2 : vector<8x128xf32>
      %c0_8 = arith.constant 0 : index
      %c0_9 = arith.constant 0 : index
      %11 = vector.load %arg5[%c0_8, %c0_9] : memref<8x128xf32, #tpu.memory_space<vmem>>, vector<8x128xf32>
      tpu.vector_store %arg5[%c0_8, %c0_9], %10 {strides = array<i32>} : memref<8x128xf32, #tpu.memory_space<vmem>>, vector<8x128xf32>,
    } else {
    }
    return
  }
  func.func @transform_0(%arg0: i32, %arg1: i32, %arg2: i32) -> (i32, i32) {
    %c0_i32 = arith.constant 0 : i32
    return %arg0, %arg2 : i32, i32
  }
  func.func @transform_1(%arg0: i32, %arg1: i32, %arg2: i32) -> (i32, i32) {
    %c0_i32 = arith.constant 0 : i32
    return %arg1, %arg2 : i32, i32
  }
  func.func @transform_2(%arg0: i32, %arg1: i32, %arg2: i32) -> (i32, i32) {
    %c0_i32 = arith.constant 0 : i32
    return %arg0, %arg1 : i32, i32
  }
}

</mosaic_0001>

<bundles_post_ra>
// kernel: tpu_custom_call.1
= control target key start
LH: loop header
LB: loop body
LE: loop exit
PB: predicated region body
PF: predicated region fallthrough
CT: control target
= control target key end

     0   :  { %s1349_s0 = inlined_call_operand.hbm [shape: f32[24,640], index: 0, kind: input, shape index: {}]   ;;  %s1350_s1 = inlined_call_operand.hbm [shape: f32[384,640], index: 1, kind: input, shape index: {}]   ;;  %s1351_s2 = inlined_call_operand.hbm [shape: f32[24,384], index: 2, kind: output, shape index: {}]  }
   0x1   :  { %1364 = sst [smem:[#allocation20_spill]] %s1351_s2 }
   0x2   :  { %7 = vsyncpa [#allocation3], 0 }
   0x3   :  { %9 = vsyncpa [#allocation3 + $0x1], 0 }
   0x4   :  { %10 = vsyncpa [#allocation6], 0 }
   0x5   :  { %12 = vsyncpa [#allocation6 + $0x1], 0 }
   0x6   :  { %13 = vsyncpa [#allocation4], 0 }
   0x7   :  { %15 = vsyncpa [#allocation4 + $0x1], 0  ;;  %s964_s9 = smov 0   ;;  %s966_s10 = smov 0  }
   0x8   :  { %s968_s11 = smov 0   ;;  %s970_s12 = smov 0  }
   0x9   :  { %s972_s13 = smov 0   ;;  %s974_s14 = smov 0  }
   0xa   :  { %s976_s15 = smov 0   ;;  %s978_s16 = smov 0  }
   0xb   :  { %s980_s17 = smov 0   ;;  %s982_s18 = smov 0  }
   0xc   :  { %s984_s19 = smov 0   ;;  %s986_s20 = smov 0  }
   0xd   :  { %s988_s21 = smov 0   ;;  %s990_s22 = smov 0  }
   0xe   :  { %s992_s23 = smov 0   ;;  %s994_s24 = smov 0  }
   0xf LB: > { %1365 = sst [smem:[#allocation11_spill]] %s886_s11  ;;  %s1352_s25 = sadd.s32 4294967295, %s938_s24   ;;  %s938_s24 = sphi %s994_s24, %s21_s24   ;;  %s934_s23 = sphi %s992_s23, %s1414_s23   ;;  %s930_s22 = sphi %s990_s22, %s1413_s22   ;;  %s926_s21 = sphi %s988_s21, %s1412_s21   ;;  %s922_s20 = sphi %s986_s20, %s1399_s20   ;;  %s918_s19 = sphi %s984_s19, %s1411_s19   ;;  %s914_s18 = sphi %s982_s18, %s1410_s18   ;;  %s910_s17 = sphi %s980_s17, %s1398_s17   ;;  %s906_s16 = sphi %s978_s16, %s1409_s16   ;;  %s902_s15 = sphi %s976_s15, %s1408_s15   ;;  %s898_s14 = sphi %s974_s14, %s1407_s14   ;;  %s894_s13 = sphi %s972_s13, %s1406_s13   ;;  %s890_s12 = sphi %s970_s12, %s1405_s12   ;;  %s886_s11 = sphi %s968_s11, %s1395_s11   ;;  %s882_s10 = sphi %s966_s10, %s1404_s10   ;;  %s878_s9 = sphi %s964_s9, %s1403_s9  }
  0x10   : > { %1366 = sst [smem:[#allocation12_spill]] %s910_s17  ;;  %s33_s27 = sadd.s32 1, %s926_s21 }
  0x11   : > { %1367 = sst [smem:[#allocation13_spill]] %s934_s23  ;;  %s36_s28 = sadd.s32 1, %s930_s22 }
  0x12   : > { %p34_p0 = scmp.ge.s32.totalorder %s33_s27, 5  ;;  %s40_s29 = sadd.s32 1, %s934_s23 }
  0x13   : > { %s49_s30 = sadd.s32 1, %s910_s17  ;;  %p56_p1 = scmp.ne.s32.totalorder %s910_s17, %s906_s16 }
  0x14   : > { %s1416_s27 = smov (%p34_p0, %s33_s27), 0  ;;  %s1418_s28 = smov (!%p34_p0, %s36_s28), %s930_s22 }
  0x15   : > { %1368 = sst [smem:[#allocation14_spill]] %s1416_s27  ;;  %s45_s3 = ssub.s32 %s926_s21, %s1416_s27 }
  0x16   : > { %p57_p2 = scmp.eq.s32.totalorder %s938_s24, 0  ;;  %p38_p3 = scmp.ge.s32.totalorder %s1418_s28, 3 }
  0x17   : > { %p62_p4 = scmp.ne.s32.totalorder %s906_s16, %s902_s15  ;;  %p1065_p6 = scmp.eq.s32.totalorder %s1352_s25, 0 }
  0x18   : > { %p1059_p5 = por %p57_p2, %p56_p1  ;;  %s1420_s28 = smov (%p38_p3, %s1418_s28), 0 }
  0x19   : > { %1371 = sst [smem:[#allocation15_spill]] %s1420_s28  ;;  %s1422_s29 = smov (!%p38_p3, %s40_s29), %s934_s23 }
  0x1a   : > { %p1074_p7 = por %p1065_p6, %p62_p4  ;;  %s72_s7 = ssub.s32 %s930_s22, %s1420_s28 }
  0x1b   : > { %p42_p8 = scmp.ge.s32.totalorder %s1422_s29, 3  ;;  %s74_s8 = sor.u32 %s72_s7, %s45_s3 }
  0x1c   : > { %s1372_s6 = scalar_select %p1074_p7, 1, 0 }
  0x1d   : > { %p75_p9 = scmp.eq.s32.totalorder %s74_s8, 0  ;;  %s77_s15 = sadd.s32 1, %s898_s14 }
  0x1e   : > { %s1424_s29 = smov (%p42_p8, %s1422_s29), 0  ;;  %p84_p10 = scmp.ne.s32.totalorder %s898_s14, %s894_s13 }
  0x1f   : > { %1373 = sst [smem:[#allocation16_spill]] %s1424_s29  ;;  %s44_s25 = ssub.s32 %s934_s23, %s1424_s29 }
  0x20   : > { %s1084_s26 = scalar_select %p75_p9, %s898_s14, %s77_s15  }
  0x21   : > { %s46_s28 = sor.u32 %s45_s3, %s44_s25  ;;  %p90_p11 = scmp.ne.s32.totalorder %s894_s13, %s890_s12 }
  0x22   : > { %1374 = sst [smem:[#allocation17_spill]] %s1084_s26  ;;  %p47_p12 = scmp.eq.s32.totalorder %s46_s28, 0 }
  0x23   : > { %p1094_p13 = por %p84_p10, %p57_p2  ;;  %p1100_p0 = por %p90_p11, %p1065_p6 }
  0x24   : > { %s102_s29 = sor.u32 %s72_s7, %s44_s25  ;;  %s105_s12 = sadd.s32 1, %s886_s11 }
  0x25   : > { %s1376_s15 = scalar_select %p1100_p0, 1, 0 }
  0x26   : > { %s1105_s27 = scalar_select %p47_p12, %s910_s17, %s49_s30  }
  0x27   : > { %p103_p1 = scmp.eq.s32.totalorder %s102_s29, 0  ;;  %p115_p3 = scmp.ne.s32.totalorder %s886_s11, %s882_s10 }
  0x28   : > { %1377 = sst [smem:[#allocation18_spill]] %s1105_s27  ;;  %s1378_s28 = sadd.s32 4294967295, %s938_s24  }
  0x29   : > { %p116_p2 = scmp.eq.s32.totalorder %s1378_s28, 44  ;;  %p121_p6 = scmp.ne.s32.totalorder %s882_s10, %s878_s9 }
  0x2a   : > { %s1113_s3 = scalar_select %p103_p1, %s886_s11, %s105_s12  }
  0x2b   : > { %p1115_p4 = por %p116_p2, %p115_p3  ;;  %s1381_s26 = sadd.s32 4294967294, %s938_s24  }
  0x2c   : > { %1379 = sst [smem:[#allocation19_spill]] %s1113_s3  ;;  %p122_p8 = scmp.eq.s32.totalorder %s1381_s26, 44 }
  0x2d   : > { %s1380_s5 = scalar_select %p1115_p4, 1, 0 }
  0x2e   : > { %p1360_p9 = scmp.lt.s32.totalorder %s938_s24, 45  ;;  %s142_s2 = sand.u32 1, %s910_s17  }
  0x2f   : > { %p1125_p10 = por %p122_p8, %p121_p6  ;;  %s464_s29 = sshll.u32 %s142_s2, 3 }
  0x30   : > { %s556_s30 = smul.u32 5, %s934_s23  ;;  %p1134_p11 = pnand %p1360_p9, %p1059_p5 }
  0x31   : > { %s1382_s25 = scalar_select %p1125_p10, 1, 0 }
  0x32   : > { %s151_s12 = sadd.s32 %s926_s21, %s556_s30  ;;  %s146_s28 = scalar_lea.vmem [#allocation2], %s464_s29 }
  0x33   : > { %s155_s27 = sshll.u32 %s146_s28, 4  ;;  %s465_s26 = sshll.u32 %s151_s12, 7  ;;  %s1139_s27 = int_to_ptr.vmem [resolvable:$true] %s155_s27 }
  0x34   : > { %s1144_s11 = scalar_lea.hbm %s1349_s0, %s465_s26  ;;  %s143_s4 = scalar_lea.sflag [#allocation3], %s142_s2 }
  0x35   : > { %s712_s23 = scalar_lea.hbm %s1144_s11, 128  ;;  %p714_p12 = pneg %p1134_p11 }
  0x36   : > { %p713_p5 = scmp.ne.s32.totalorder %s1144_s11, %s712_s23  ;;  %s717_s12 = scalar_lea.hbm %s1349_s0, 1920 }
  0x37   : > { %p718_p2 = scmp.lt.u32.totalorder %s1144_s11, %s1349_s0  ;;  %p719_p6 = scmp.lt.u32.totalorder %s717_s12, %s712_s23 }
  0x38   : > { %p715_p1 = pnand %p714_p12, %p713_p5  ;;  %p721_p9 = scmp.lt.u32.totalorder %s712_s23, %s1144_s11 }
  0x39   : > { %p720_p8 = por %p719_p6, %p718_p2 }
  0x3a   : > { %p716_p3 = pneg %p715_p1 }
  0x3b   : > { %p722_p10 = por %p721_p9, %p720_p8 }
  0x3d   : > { %p723_p4 = pnand %p722_p10, %p716_p3 }
  0x3f   : > { %726 = shalt.err (!%p723_p4)
}
  0x40   : > { %s727_s2 = scalar_lea.vmem %s1139_s27, 128  ;;  %s940_s28 = smov [#allocation2]  }
  0x41   : > { %p728_p5 = scmp.ne.s32.totalorder %s1139_s27, %s727_s2  ;;  %s732_s26 = sshll.u32 %s940_s28, 4  ;;  %s733_s26 = int_to_ptr.vmem [resolvable:$false] %s732_s26 }
  0x42   : > { %s734_s29 = scalar_lea.vmem %s733_s26, 256  ;;  %p735_p7 = scmp.lt.s32.totalorder %s1139_s27, %s733_s26 }
  0x43   : > { %p730_p1 = pnand %p728_p5, %p714_p12  ;;  %p736_p2 = scmp.lt.s32.totalorder %s734_s29, %s727_s2 }
  0x45   : > { %p731_p0 = pneg %p730_p1  ;;  %p737_p6 = por %p736_p2, %p735_p7 }
  0x47   : > { %p738_p9 = pnand %p737_p6, %p731_p0 }
  0x49   : > { %741 = shalt.err (!%p738_p9)
}
  0x4a   : > { %568 = dma.hbm_to_vmem [thread:$0]  (!%p1134_p11), %s1144_s11, 128, %s1139_s27, %s143_s4  }
  0x4b   : > { %s557_s23 = smul.u32 80, %s930_s22  ;;  %p1384_p4 = scmp.lt.s32.totalorder %s938_s24, 45 }
  0x4c   : > { %p470_p7 = scmp.ge.s32.totalorder %s938_s24, 1  ;;  %p183_p0 = scmp.lt.s32.totalorder %s938_s24, 46 }
  0x4d   : > { %p1176_p10 = pnand %p1384_p4, %p1094_p13  ;;  %s172_s7 = sadd.s32 %s926_s21, %s557_s23 }
  0x4e   : > { %p1183_p12 = pnand %p470_p7, %p183_p0  ;;  %s162_s17 = sand.u32 1, %s898_s14  }
  0x4f   : > { %s466_s3 = sshll.u32 %s162_s17, 7  ;;  %s469_s2 = sshll.u32 %s172_s7, 7 }
  0x50   : > { %s1191_s8 = scalar_lea.hbm %s1350_s1, %s469_s2  ;;  %s166_s4 = scalar_lea.vmem [#allocation5], %s466_s3 }
  0x51   : > { %s175_s28 = sshll.u32 %s166_s4, 4  ;;  %s1195_s26 = scalar_lea.sflag [#allocation6], %s162_s17  ;;  %s1193_s28 = int_to_ptr.vmem [resolvable:$true] %s175_s28 }
  0x52   : > { %s742_s29 = scalar_lea.hbm %s1191_s8, 2048  ;;  %p744_p11 = pneg %p1176_p10 }
  0x53   : > { %p743_p13 = scmp.ne.s32.totalorder %s1191_s8, %s742_s29  ;;  %s747_s2 = scalar_lea.hbm %s1350_s1, 30720 }
  0x54   : > { %p748_p5 = scmp.lt.u32.totalorder %s1191_s8, %s1350_s1  ;;  %p749_p1 = scmp.lt.u32.totalorder %s747_s2, %s742_s29 }
  0x55   : > { %p745_p3 = pnand %p744_p11, %p743_p13  ;;  %p751_p6 = scmp.lt.u32.totalorder %s742_s29, %s1191_s8 }
  0x56   : > { %p750_p2 = por %p749_p1, %p748_p5 }
  0x57   : > { %p746_p8 = pneg %p745_p3 }
  0x58   : > { %p752_p9 = por %p751_p6, %p750_p2 }
  0x5a   : > { %p753_p4 = pnand %p752_p9, %p746_p8 }
  0x5c   : > { %756 = shalt.err (!%p753_p4)
}
  0x5d   : > { %s757_s17 = scalar_lea.vmem %s1193_s28, 2048  ;;  %s941_s3 = smov [#allocation5]  }
  0x5e   : > { %p758_p7 = scmp.ne.s32.totalorder %s1193_s28, %s757_s17  ;;  %s762_s4 = sshll.u32 %s941_s3, 4  ;;  %s763_s4 = int_to_ptr.vmem [resolvable:$false] %s762_s4 }
  0x5f   : > { %s764_s23 = scalar_lea.vmem %s763_s4, 4096  ;;  %p765_p3 = scmp.lt.s32.totalorder %s1193_s28, %s763_s4 }
  0x60   : > { %p760_p0 = pnand %p758_p7, %p744_p11  ;;  %p766_p5 = scmp.lt.s32.totalorder %s764_s23, %s757_s17 }
  0x62   : > { %p761_p13 = pneg %p760_p0  ;;  %p767_p1 = por %p766_p5, %p765_p3 }
  0x64   : > { %p768_p2 = pnand %p767_p1, %p761_p13 }
  0x66   : > { %771 = shalt.err (!%p768_p2)
}
  0x67   : > { %s942_s29 = smov 640   ;;  %s943_s7 = smov 128  }
  0x68   : > { %s944_s2 = smov 8   ;;  %187 = sbr.rel (%p1183_p12) target bundleno = 434 (0x1b2), region = 28 }
  0x69   : > { %571 = dma.hbm_to_vmem [thread:$0]  (!%p1176_p10), %s1191_s8, 2048, %s1193_s28, %s1195_s26, %s942_s29, %s943_s7, %s944_s2  }
  0x6a   : > { %s189_s11 = sand.u32 (!%p1183_p12), 1, %s906_s16   ;;  %p1387_p11 = scmp.ne.s32.totalorder (!%p1183_p12), %s1372_s6, 0 }
  0x6b   : > { %s1226_s27 = sshll.u32 (!%p1183_p12), %s189_s11, 3  ;;  %s190_s17 = scalar_lea.sflag (!%p1183_p12), [#allocation3], %s189_s11 }
  0x6c   : > { %s193_s3 = scalar_lea.vmem (!%p1183_p12), [#allocation2], %s1226_s27 }
  0x6f   : > { %865 = dma.done.wait (%p1387_p11), %s190_s17, 128  }
  0x70   : > { %867 = vsyncadd (%p1387_p11), %s190_s17, 4294967168  ;;  %s198_s30 = sand.u32 1, %s894_s13   ;;  %p1388_p10 = scmp.ne.s32.totalorder %s1376_s15, 0 }
  0x71   : > { %s472_s8 = sshll.u32 %s198_s30, 7  ;;  %s199_s28 = scalar_lea.sflag [#allocation6], %s198_s30 }
  0x72   : > { %s1234_s12 = scalar_lea.vmem [#allocation5], %s472_s8 }
  0x73   : > { %869 = dma.done.wait (%p1388_p10), %s199_s28, 2048  }
  0x74   : > { %871 = vsyncadd (%p1388_p10), %s199_s28, 4294965248  ;;  %s225_s6 = sand.u32 1, %s882_s10   ;;  %v945_v0 = vmov 0.0|0.0   ;;  %vm946_vm0 = vmmov 0   ;;  %v947_v1 = vmov 0.0   ;;  %v230_v2 = vld [vmem:[%s1234_s12] sm:$0xff] }
  0x75   : > { %s1243_s26 = sshll.u32 %s225_s6, 3  ;;  %532 = vmatprep.subr.bf16.mxu0 %v945_v0  ;;  %529 = vmatprep.mubr.msk.f32.mxu0 %vm946_vm0, %v947_v1  ;;  %v231_v3 = vld [vmem:[%s1234_s12 + $0x8] sm:$0xff]  ;;  %v232_v5 = vld [vmem:[%s1234_s12 + $0x10] sm:$0xff]  ;;  %v233_v6 = vld [vmem:[%s1234_s12 + $0x18] sm:$0xff]  ;;  %p474_p12 = scmp.ne.s32.totalorder %s914_s18, 0 }
  0x76   : > { %v533_v4 = vpack.c.bf16 %v231_v3, %v230_v2  ;;  %v536_v7 = vpack.c.bf16 %v233_v6, %v232_v5  ;;  %v234_v8 = vld [vmem:[%s1234_s12 + $0x20] sm:$0xff]  ;;  %v235_v9 = vld [vmem:[%s1234_s12 + $0x28] sm:$0xff]  ;;  %v236_v11 = vld [vmem:[%s1234_s12 + $0x30] sm:$0xff]  ;;  %s227_s15 = scalar_lea.vmem [#allocation7], %s1243_s26 }
  0x77   : > { %v539_v10 = vpack.c.bf16 %v235_v9, %v234_v8  ;;  %v237_v12 = vld [vmem:[%s1234_s12 + $0x38] sm:$0xff]  ;;  %v238_v14 = vld [vmem:[%s1234_s12 + $0x40] sm:$0xff]  ;;  %v239_v15 = vld [vmem:[%s1234_s12 + $0x48] sm:$0xff] }
  0x78   : > { %534 = vmatpush3.bf16.xpose.msra.mxu0 %v533_v4  ;;  %v542_v13 = vpack.c.bf16 %v237_v12, %v236_v11  ;;  %v545_v16 = vpack.c.bf16 %v239_v15, %v238_v14  ;;  %v240_v17 = vld [vmem:[%s1234_s12 + $0x50] sm:$0xff]  ;;  %v241_v18 = vld [vmem:[%s1234_s12 + $0x58] sm:$0xff]  ;;  %v242_v20 = vld [vmem:[%s1234_s12 + $0x60] sm:$0xff] }
  0x79   : > { %535 = vmatprep.subr.bf16.mxu0 %v945_v0  ;;  %v548_v19 = vpack.c.bf16 %v241_v18, %v240_v17  ;;  %v243_v21 = vld [vmem:[%s1234_s12 + $0x68] sm:$0xff]  ;;  %v244_v23 = vld [vmem:[%s1234_s12 + $0x70] sm:$0xff]  ;;  %v245_v24 = vld [vmem:[%s1234_s12 + $0x78] sm:$0xff] }
  0x7a   : > { %v551_v22 = vpack.c.bf16 %v243_v21, %v242_v20  ;;  %v554_v25 = vpack.c.bf16 %v245_v24, %v244_v23  ;;  %v229_v26 = vld [vmem:[%s193_s3] sm:$0xff] }
  0x80   : > { %537 = vmatpush3.bf16.xpose.msra.mxu0 %v536_v7 }
  0x81   : > { %538 = vmatprep.subr.bf16.mxu0 %v945_v0 }
  0x88   : > { %540 = vmatpush3.bf16.xpose.msra.mxu0 %v539_v10 }
  0x89   : > { %541 = vmatprep.subr.bf16.mxu0 %v945_v0 }
  0x90   : > { %543 = vmatpush3.bf16.xpose.msra.mxu0 %v542_v13 }
  0x91   : > { %544 = vmatprep.subr.bf16.mxu0 %v945_v0 }
  0x98   : > { %546 = vmatpush3.bf16.xpose.msra.mxu0 %v545_v16 }
  0x99   : > { %547 = vmatprep.subr.bf16.mxu0 %v945_v0 }
  0xa0   : > { %549 = vmatpush3.bf16.xpose.msra.mxu0 %v548_v19 }
  0xa1   : > { %550 = vmatprep.subr.bf16.mxu0 %v945_v0 }
  0xa8   : > { %552 = vmatpush3.bf16.xpose.msra.mxu0 %v551_v22 }
  0xa9   : > { %553 = vmatprep.subr.bf16.mxu0 %v945_v0 }
  0xb0   : > { %555 = vmatpush3.bf16.xpose.msra.mxu0 %v554_v25 }
  0xb7   : > { %530 = vmatmul.mubr.f32.vlgmr.msra.gmra.mrb[0].mxu0 %v229_v26 }
 0x185   : > { %319 = sbr.rel (%p474_p12) target bundleno = 396 (0x18c), region = 40 }
 0x18a   : > { %v312_v27 = vpop.f32.mrb[0].mxu0 }
 0x18b   : > { %v531_v28 = vpop.f32.mrb[1].mxu0  ;;  %320 = vst [vmem:[%s227_s15] sm:$0xff] (!%p474_p12), %v312_v27 }
 0x18c PF: > { %p475_p8 = scmp.le.s32.totalorder %s914_s18, 0 }
 0x18e   : > { %324 = sbr.rel (%p475_p8) target bundleno = 406 (0x196), region = 44 }
 0x192   : > { %v325_v29 = vld [vmem:[%s227_s15] sm:$0xff] (!%p475_p8) }
 0x193   : > { %v326_v30 = vadd.f32 (!%p475_p8), %v325_v29, %v312_v27 }
 0x195   : > { %327 = vst [vmem:[%s227_s15] sm:$0xff] %v326_v30 }
 0x196 PF: > { %s558_s4 = smul.u32 3, %s922_s20  ;;  %s344_s23 = sshll.u32 %s227_s15, 4  ;;  %s1268_s23 = int_to_ptr.vmem [resolvable:$true] %s344_s23 }
 0x197   : > { %s1389_s11 = sld [smem:[#allocation20_spill]]  ;;  %s329_s3 = scalar_lea.sflag [#allocation4], %s225_s6 }
 0x198   : > { %s340_s29 = sadd.s32 %s918_s19, %s558_s4  ;;  %s772_s30 = scalar_lea.vmem %s1268_s23, 128 }
 0x199   : > { %s477_s7 = sshll.u32 %s340_s29, 7  ;;  %p773_p6 = scmp.ne.s32.totalorder %s1268_s23, %s772_s30 }
 0x19a   : > { %p1391_p9 = scmp.ne.s32.totalorder %s1380_s5, 0  ;;  %s948_s20 = smov [#allocation7]  }
 0x19b   : > { %s776_s8 = sshll.u32 %s948_s20, 4  ;;  %s777_s8 = int_to_ptr.vmem [resolvable:$false] %s776_s8 }
 0x19c   : > { %p774_p4 = pnand %p773_p6, %p1391_p9  ;;  %s778_s19 = scalar_lea.vmem %s777_s8, 256 }
 0x19d   : > { %s1390_s27 = smov %s1389_s11  ;;  %s342_s17 = scalar_lea.hbm %s1389_s11, %s477_s7 }
 0x19e   : > { %p775_p7 = pneg %p774_p4  ;;  %p779_p0 = scmp.lt.s32.totalorder %s1268_s23, %s777_s8 }
 0x19f   : > { %p780_p13 = scmp.lt.s32.totalorder %s778_s19, %s772_s30 }
 0x1a1   : > { %p781_p3 = por %p780_p13, %p779_p0 }
 0x1a3   : > { %p782_p5 = pnand %p781_p3, %p775_p7 }
 0x1a5   : > { %785 = shalt.err (!%p782_p5)
}
 0x1a6   : > { %s786_s28 = scalar_lea.hbm %s342_s17, 128  ;;  %s790_s26 = scalar_lea.hbm %s1390_s27, 1152 }
 0x1a7   : > { %p787_p1 = scmp.ne.s32.totalorder %s342_s17, %s786_s28  ;;  %p791_p10 = scmp.lt.u32.totalorder %s342_s17, %s1390_s27 }
 0x1a8   : > { %p792_p12 = scmp.lt.u32.totalorder %s790_s26, %s786_s28  ;;  %p794_p6 = scmp.lt.u32.totalorder %s786_s28, %s342_s17 }
 0x1a9   : > { %p788_p2 = pnand %p787_p1, %p1391_p9 }
 0x1aa   : > { %p793_p8 = por %p792_p12, %p791_p10 }
 0x1ab   : > { %p789_p11 = pneg %p788_p2 }
 0x1ac   : > { %p795_p4 = por %p794_p6, %p793_p8 }
 0x1ae   : > { %p796_p7 = pnand %p795_p4, %p789_p11 }
 0x1b0   : > { %799 = shalt.err (!%p796_p7)
}
 0x1b1   : > { %563 = dma.vmem_to_hbm [thread:$0]  (%p1391_p9), %s1268_s23, 128, %s342_s17, %s329_s3  }
 0x1b2 PF: > { %p577_p0 = scmp.ge.s32.totalorder %s938_s24, 2  ;;  %s356_s29 = sand.u32 1, %s878_s9  }
 0x1b3   : > { %p1392_p13 = scmp.ne.s32.totalorder %s1382_s25, 0  ;;  %s357_s7 = scalar_lea.sflag [#allocation4], %s356_s29 }
 0x1b5   : > { %p573_p3 = pnand %p577_p0, %p1392_p13 }
 0x1b7   : > { %873 = dma.done.wait (!%p573_p3), %s357_s7, 128  }
 0x1b8   : > { %875 = vsyncadd (!%p573_p3), %s357_s7, 4294967168  ;;  %s21_s24 = sadd.s32 1, %s938_s24   ;;  %s1394_s5 = sld [smem:[#allocation11_spill]] }
 0x1b9   : > { %p1296_p5 = scmp.ge.s32.totalorder %s21_s24, 47   ;;  %s1395_s11 = sld [smem:[#allocation19_spill]] }
 0x1ba   : > { %s1396_s23 = sld [smem:[#allocation17_spill]]  ;;  %s1397_s18 = sld [smem:[#allocation12_spill]] }
 0x1bb   : > { %s1398_s17 = sld [smem:[#allocation18_spill]]  ;;  %s1399_s20 = sld [smem:[#allocation13_spill]] }
 0x1bc   : > { %s1400_s25 = sld [smem:[#allocation14_spill]]  ;;  %s1401_s3 = sld [smem:[#allocation15_spill]] }
 0x1bd   : > { %s1402_s30 = sld [smem:[#allocation16_spill]]  ;;  %s1403_s9 = smov %s882_s10 }
 0x1be   : > { %s1404_s10 = smov %s1394_s5  ;;  %s1405_s12 = smov %s894_s13 }
 0x1bf   : > { %s1406_s13 = smov %s898_s14  ;;  %s1408_s15 = smov %s906_s16 }
 0x1c0   : > { %s1407_s14 = smov %s1396_s23  ;;  %s1409_s16 = smov %s1397_s18 }
 0x1c1   : > { %s1410_s18 = smov %s926_s21  ;;  %s1411_s19 = smov %s930_s22 }
 0x1c2   : > { %s1412_s21 = smov %s1400_s25  ;;  %s1413_s22 = smov %s1401_s3 }
 0x1c3   : > { %s1414_s23 = smov %s1402_s30  ;;  %20 = sbr.rel (!%p1296_p5) target bundleno = 15 (0xf), region = 94 }
 0x1ca   :  { %362 = vsyncpa [#allocation3], 1 }
 0x1cb   :  { %364 = vsyncpa [#allocation3 + $0x1], 1 }
 0x1cc   :  { %365 = vsyncpa [#allocation6], 1 }
 0x1cd   :  { %367 = vsyncpa [#allocation6 + $0x1], 1 }
 0x1ce   :  { %368 = vsyncpa [#allocation4], 1 }
 0x1cf   :  { %370 = vsyncpa [#allocation4 + $0x1], 1 }

</bundles_post_ra>
